<compile_context>
chip_gen: v7x
topology: tpu7x:2x2x1
jax: 0.10.0
libtpu: 0.0.40
codegen_flags: <defaults>
</compile_context>

<pallas_src>
import functools

import numpy as np
import jax
import jax.numpy as jnp
from jax import lax
from jax.experimental import pallas as pl
from jax.experimental.pallas import tpu as pltpu


def _align8(n):
    return (n + 7) // 8 * 8


# ----------------------------------------------------------------------------
# Host-side (numpy) packing of all parameters / constants into ONE slab.
# ----------------------------------------------------------------------------
def pack_params(params, B, N, D, Din):
    Cz = D + Din                  # Z-branch (concat) channels
    Cb = D + Cz                   # fused per-batch channels  [Y(16) | Z(32)]
    Ct = B * Cb                   # fused lane width (batch x branch channels)
    BN = B * N
    L1 = N - 2                    # length after k=3 conv
    T1 = L1 - 2                   # window starts for MaxPool(3, 2)
    P1 = (L1 - 3) // 2 + 1        # length after pool1
    T2 = P1 - 1                   # window starts for MaxPool(2, 2)
    P2 = (P1 - 2) // 2 + 1        # length after pool2
    cols = max(Ct, BN, 2 * D)

    p = {k: np.asarray(v, np.float32) for k, v in params.items()}

    # Attention Linear(2D -> D): rows 0:D act on the energy half, D:2D on key.
    w_att = np.concatenate([p["w_att_e"], p["w_att_k"]], axis=0)          # [2D, D]

    # k=3 conv as im2col weight, block-diagonal over (batch, branch).
    w1 = np.zeros((3 * Ct, Ct), np.float32)
    for t in range(3):
        for b in range(B):
            r, c = t * Ct + b * Cb, b * Cb
            w1[r:r + D, c:c + D] = p["w_c1"][t]                 # Y branch
            w1[r + D:r + Cb, c + D:c + Cb] = p["w_cc1"][t]      # Z branch
    # k=1 conv, block-diagonal over (batch, branch).
    w2 = np.zeros((Ct, Ct), np.float32)
    for b in range(B):
        c = b * Cb
        w2[c:c + D, c:c + D] = p["w_c2"]
        w2[c + D:c + Cb, c + D:c + Cb] = p["w_cc2"]

    # Head: mlp_y on the Y rows, mlp_z on the Z rows, per batch lane-group.
    wh_y = np.zeros((Ct, 2 * B), np.float32)
    wh_z = np.zeros((Ct, 2 * B), np.float32)
    bh_y = np.zeros((1, 2 * B), np.float32)
    bh_z = np.zeros((1, 2 * B), np.float32)
    b1 = np.zeros((1, Ct), np.float32)
    b2 = np.zeros((1, Ct), np.float32)
    for b in range(B):
        c = b * Cb
        wh_y[c:c + D, 2 * b:2 * b + 2] = p["w_mlp_y"]
        wh_z[c + D:c + Cb, 2 * b:2 * b + 2] = p["w_mlp_z"]
        bh_y[:, 2 * b:2 * b + 2] = p["b_mlp_y"]
        bh_z[:, 2 * b:2 * b + 2] = p["b_mlp_z"]
        b1[:, c:c + D] = p["b_c1"]
        b1[:, c + D:c + Cb] = p["b_cc1"]
        b2[:, c:c + D] = p["b_c2"]
        b2[:, c + D:c + Cb] = p["b_cc2"]
    gamma = np.concatenate([p["gamma_y"], p["gamma_z"]], axis=-1)         # [1, Cb]
    beta = np.concatenate([p["beta_y"], p["beta_z"]], axis=-1)            # [1, Cb]

    # BN batch-fold matrix: sums the B lane-groups onto the true channel axis.
    fold = np.zeros((Ct, Cb), np.float32)
    for b in range(B):
        fold[b * Cb:(b + 1) * Cb, :] = np.eye(Cb, dtype=np.float32)

    # Additive attention block mask (keeps batches independent in the
    # flattened [B*N, B*N] score matrix).
    bidx = np.repeat(np.arange(B), N)
    amask = np.where(bidx[:, None] == bidx[None, :], 0.0, -1e30).astype(np.float32)

    # Stride-2 pool selection matrices (constants, no in-kernel iota).
    sel1 = (np.arange(T1)[None, :] == 2 * np.arange(P1)[:, None]).astype(np.float32)
    sel2 = (np.arange(T2)[None, :] == 2 * np.arange(P2)[:, None]).astype(np.float32)

    sections = [("w_att", w_att), ("w1", w1), ("w2", w2),
                ("wh_y", wh_y), ("wh_z", wh_z), ("fold", fold),
                ("amask", amask), ("sel1", sel1), ("sel2", sel2),
                ("b_att", p["b_att"]), ("b1", b1), ("gamma", gamma),
                ("beta", beta), ("b2", b2), ("bh_y", bh_y), ("bh_z", bh_z)]

    offsets, blocks, row = {}, [], 0
    for name, arr in sections:                     # 8-row aligned sections
        offsets[name] = row
        r = _align8(arr.shape[0])
        pad = np.zeros((r, cols), np.float32)
        pad[:arr.shape[0], :arr.shape[1]] = arr
        blocks.append(pad)
        row += r
    slab = np.concatenate(blocks, axis=0)
    return jnp.asarray(slab), offsets


# ----------------------------------------------------------------------------
# Fused kernel: attention -> fused conv/BN/relu/pool branch -> MLP head.
# ----------------------------------------------------------------------------
def _make_kernel(B, N, D, Din, off):
    Cz = D + Din
    Cb = D + Cz
    Ct = B * Cb
    BN = B * N
    L1 = N - 2
    T1 = L1 - 2
    P1 = (L1 - 3) // 2 + 1
    T2 = P1 - 1
    P2 = (P1 - 2) // 2 + 1

    def kernel(nodes_ref, feat_ref, slab_ref, o_ref):
        f32 = jnp.float32

        def sec(name, n_rows, n_cols):             # static window of the slab
            o = off[name]
            return slab_ref[o:o + n_rows, 0:n_cols]

        w_att = sec("w_att", 2 * D, D)
        w1 = sec("w1", 3 * Ct, Ct)
        w2 = sec("w2", Ct, Ct)
        wh_y = sec("wh_y", Ct, 2 * B)
        wh_z = sec("wh_z", Ct, 2 * B)
        fold = sec("fold", Ct, Cb)
        amask = sec("amask", BN, BN)
        sel1 = sec("sel1", P1, T1)
        sel2 = sec("sel2", P2, T2)
        b_att = sec("b_att", 1, D)
        b1 = sec("b1", 1, Ct)
        gamma = sec("gamma", 1, Cb)
        beta = sec("beta", 1, Cb)
        b2 = sec("b2", 1, Ct)
        bh_y = sec("bh_y", 1, 2 * B)
        bh_z = sec("bh_z", 1, 2 * B)

        # ---------- Attention (key == query == GGNN outputs), flattened ----
        kflat = jnp.concatenate([nodes_ref[b] for b in range(B)], axis=0)   # [BN,D]
        s = jnp.einsum("nd,md->nm", kflat, kflat, preferred_element_type=f32)
        s = s + amask                                  # mask off-batch blocks
        s = s - jnp.max(s, axis=0, keepdims=True)      # torch f.softmax(dim=1)
        e = jnp.exp(s)
        attn = e * pl.reciprocal(jnp.sum(e, axis=0, keepdims=True), approx=True)
        energy = jnp.dot(attn, kflat, preferred_element_type=f32)           # [BN,D]
        # tanh(Linear(cat(energy, key)))
        h = jnp.tanh(
            jnp.dot(jnp.concatenate([energy, kflat], axis=-1), w_att,
                    preferred_element_type=f32) + b_att)                    # [BN,D]

        # ---------- Fused conv branch: batch x (Y|Z) channels on lanes ------
        # per batch lane-group of width Cb: [ Y input = h | Z input = (h, x) ]
        pieces = []
        for b in range(B):
            hb = h[b * N:(b + 1) * N, :]
            pieces += [hb, hb, feat_ref[b]]
        yz = jnp.concatenate(pieces, axis=-1)                               # [N, Ct]

        def bn_relu(y, inv_n):
            # training-mode BatchNorm1d (biased var, eps=1e-5); single pass
            # (E[x^2]-E[x]^2), batch lane-groups folded with one tiny matmul,
            # gamma*rsqrt pre-folded into one per-channel scale.
            stats = jnp.concatenate(
                [jnp.sum(y, axis=0, keepdims=True),
                 jnp.sum(y * y, axis=0, keepdims=True)], axis=0)            # [2, Ct]
            folded = jnp.dot(stats, fold, preferred_element_type=f32) * inv_n
            mean = folded[0:1, :]                                           # [1, Cb]
            var = jnp.maximum(folded[1:2, :] - mean * mean, 0.0)
            scale = gamma * lax.rsqrt(var + 1e-5)
            shift = beta - mean * scale
            scale = jnp.concatenate([scale] * B, axis=-1)                   # [1, Ct]
            shift = jnp.concatenate([shift] * B, axis=-1)
            return jnp.maximum(y * scale + shift, 0.0)

        # Conv1d(k=3) as ONE im2col matmul against the block-diagonal weight.
        yc = jnp.concatenate([yz[t:t + L1, :] for t in range(3)], axis=-1)  # [L1,3Ct]
        y = bn_relu(jnp.dot(yc, w1, preferred_element_type=f32) + b1,
                    1.0 / (B * L1))
        # MaxPool1d(3, stride=2): sliding max + constant stride-2 selection.
        m = jnp.maximum(jnp.maximum(y[0:T1, :], y[1:T1 + 1, :]), y[2:T1 + 2, :])
        y = jnp.dot(sel1, m, preferred_element_type=f32)                    # [P1, Ct]
        # Conv1d(k=1) -> BN -> ReLU -> MaxPool1d(2, stride=2).
        y = bn_relu(jnp.dot(y, w2, preferred_element_type=f32) + b2,
                    1.0 / (B * P1))
        m = jnp.maximum(y[0:T2, :], y[1:T2 + 1, :])
        y = jnp.dot(sel2, m, preferred_element_type=f32)                    # [P2, Ct]

        # ---------- Head: mlp_y(Y2) * mlp_z(Z2), mean over length, sigmoid --
        py = jnp.dot(y, wh_y, preferred_element_type=f32) + bh_y            # [P2, 2B]
        pz = jnp.dot(y, wh_z, preferred_element_type=f32) + bh_z            # [P2, 2B]
        avg = jnp.mean(py * pz, axis=0, keepdims=True)                      # [1, 2B]
        o_ref[...] = (1.0 / (1.0 + jnp.exp(-avg))).astype(o_ref.dtype)      # exact

    return kernel


# ----------------------------------------------------------------------------
# Wrapper: one pallas_call, 3 inputs, everything resident in VMEM.
# ----------------------------------------------------------------------------
def attn_mvul_forward(outputs, features, slab, *, offsets, dims):
    B, N, D, Din = dims
    kernel = _make_kernel(B, N, D, Din, offsets)
    vmem = pl.BlockSpec(memory_space=pltpu.MemorySpace.VMEM)
    out = pl.pallas_call(
        kernel,
        out_shape=jax.ShapeDtypeStruct((1, 2 * B), jnp.float32),
        in_specs=[vmem, vmem, vmem],
        out_specs=vmem,
    )(outputs, features, slab)
    return out.reshape(B, 2)


if __name__ == "__main__":
    input_dim, output_dim = 16, 16
    concat_dim = input_dim + output_dim
    B, N = 2, 16

    rng = jax.random.PRNGKey(0)
    keys = jax.random.split(rng, 18)

    # Dense tensor outputs of the graph front-end (see TODO(synk) above).
    outputs = jax.random.normal(keys[0], (B, N, output_dim), jnp.float32)
    features = jax.random.normal(keys[1], (B, N, input_dim), jnp.float32)

    s = 0.1
    params = {
        # Attention.linear (weight [D, 2D] split into energy/key halves, transposed)
        "w_att_e": s * jax.random.normal(keys[2], (output_dim, output_dim), jnp.float32),
        "w_att_k": s * jax.random.normal(keys[3], (output_dim, output_dim), jnp.float32),
        "b_att":   s * jax.random.normal(keys[4], (1, output_dim), jnp.float32),
        # conv_l1 / conv_l2 on h_i  (weights stored as [k, Cin, Cout] / [Cin, Cout])
        "w_c1": s * jax.random.normal(keys[5], (3, output_dim, output_dim), jnp.float32),
        "b_c1": s * jax.random.normal(keys[6], (1, output_dim), jnp.float32),
        "w_c2": s * jax.random.normal(keys[7], (output_dim, output_dim), jnp.float32),
        "b_c2": s * jax.random.normal(keys[8], (1, output_dim), jnp.float32),
        "gamma_y": jnp.ones((1, output_dim), jnp.float32),
        "beta_y":  jnp.zeros((1, output_dim), jnp.float32),
        # conv_l1_for_concat / conv_l2_for_concat on c_i
        "w_cc1": s * jax.random.normal(keys[9], (3, concat_dim, concat_dim), jnp.float32),
        "b_cc1": s * jax.random.normal(keys[10], (1, concat_dim), jnp.float32),
        "w_cc2": s * jax.random.normal(keys[11], (concat_dim, concat_dim), jnp.float32),
        "b_cc2": s * jax.random.normal(keys[12], (1, concat_dim), jnp.float32),
        "gamma_z": jnp.ones((1, concat_dim), jnp.float32),
        "beta_z":  jnp.zeros((1, concat_dim), jnp.float32),
        # mlp_y / mlp_z (stored transposed: [Cin, 2])
        "w_mlp_y": s * jax.random.normal(keys[13], (output_dim, 2), jnp.float32),
        "b_mlp_y": s * jax.random.normal(keys[14], (1, 2), jnp.float32),
        "w_mlp_z": s * jax.random.normal(keys[15], (concat_dim, 2), jnp.float32),
        "b_mlp_z": s * jax.random.normal(keys[16], (1, 2), jnp.float32),
    }

    # Pack parameters / constants once on the host into a single slab.
    slab, offsets = pack_params(params, B, N, output_dim, input_dim)
    dims = (B, N, output_dim, input_dim)

    fwd = jax.jit(functools.partial(attn_mvul_forward, offsets=offsets, dims=dims))
    result = fwd(outputs, features, slab)
    jax.block_until_ready(result)
    assert result.shape == (B, 2)
    print("KERNEL_OK")
</pallas_src>

<mosaic_0001>
module attributes {stable_mosaic.version = 11 : i64} {
  func.func @kernel(%arg0: memref<2x16x16xf32, #tpu.memory_space<vmem>>, %arg1: memref<2x16x16xf32, #tpu.memory_space<vmem>>, %arg2: memref<808x96xf32, #tpu.memory_space<vmem>>, %arg3: memref<1x4xf32, #tpu.memory_space<vmem>>) attributes {dimension_semantics = [], scalar_prefetch = 0 : i64, scratch_operands = 0 : i64, tpu.core_type = #tpu.core_type<tc>} {
    %c0 = arith.constant 0 : index
    %c0_0 = arith.constant 0 : index
    %0 = vector.load %arg2[%c0, %c0_0] : memref<808x96xf32, #tpu.memory_space<vmem>>, vector<32x16xf32>
    %c32 = arith.constant 32 : index
    %c0_1 = arith.constant 0 : index
    %1 = vector.load %arg2[%c32, %c0_1] : memref<808x96xf32, #tpu.memory_space<vmem>>, vector<288x96xf32>
    %c320 = arith.constant 320 : index
    %c0_2 = arith.constant 0 : index
    %2 = vector.load %arg2[%c320, %c0_2] : memref<808x96xf32, #tpu.memory_space<vmem>>, vector<96x96xf32>
    %c416 = arith.constant 416 : index
    %c0_3 = arith.constant 0 : index
    %3 = vector.load %arg2[%c416, %c0_3] : memref<808x96xf32, #tpu.memory_space<vmem>>, vector<96x4xf32>
    %c512 = arith.constant 512 : index
    %c0_4 = arith.constant 0 : index
    %4 = vector.load %arg2[%c512, %c0_4] : memref<808x96xf32, #tpu.memory_space<vmem>>, vector<96x4xf32>
    %c608 = arith.constant 608 : index
    %c0_5 = arith.constant 0 : index
    %5 = vector.load %arg2[%c608, %c0_5] : memref<808x96xf32, #tpu.memory_space<vmem>>, vector<96x48xf32>
    %c704 = arith.constant 704 : index
    %c0_6 = arith.constant 0 : index
    %6 = vector.load %arg2[%c704, %c0_6] : memref<808x96xf32, #tpu.memory_space<vmem>>, vector<32x32xf32>
    %c736 = arith.constant 736 : index
    %c0_7 = arith.constant 0 : index
    %7 = vector.load %arg2[%c736, %c0_7] : memref<808x96xf32, #tpu.memory_space<vmem>>, vector<6x12xf32>
    %c744 = arith.constant 744 : index
    %c0_8 = arith.constant 0 : index
    %8 = vector.load %arg2[%c744, %c0_8] : memref<808x96xf32, #tpu.memory_space<vmem>>, vector<3x5xf32>
    %c752 = arith.constant 752 : index
    %c0_9 = arith.constant 0 : index
    %9 = vector.load %arg2[%c752, %c0_9] : memref<808x96xf32, #tpu.memory_space<vmem>>, vector<1x16xf32>
    %c760 = arith.constant 760 : index
    %c0_10 = arith.constant 0 : index
    %10 = vector.load %arg2[%c760, %c0_10] : memref<808x96xf32, #tpu.memory_space<vmem>>, vector<1x96xf32>
    %c768 = arith.constant 768 : index
    %c0_11 = arith.constant 0 : index
    %11 = vector.load %arg2[%c768, %c0_11] : memref<808x96xf32, #tpu.memory_space<vmem>>, vector<1x48xf32>
    %c776 = arith.constant 776 : index
    %c0_12 = arith.constant 0 : index
    %12 = vector.load %arg2[%c776, %c0_12] : memref<808x96xf32, #tpu.memory_space<vmem>>, vector<1x48xf32>
    %c784 = arith.constant 784 : index
    %c0_13 = arith.constant 0 : index
    %13 = vector.load %arg2[%c784, %c0_13] : memref<808x96xf32, #tpu.memory_space<vmem>>, vector<1x96xf32>
    %c792 = arith.constant 792 : index
    %c0_14 = arith.constant 0 : index
    %14 = vector.load %arg2[%c792, %c0_14] : memref<808x96xf32, #tpu.memory_space<vmem>>, vector<1x4xf32>
    %c800 = arith.constant 800 : index
    %c0_15 = arith.constant 0 : index
    %15 = vector.load %arg2[%c800, %c0_15] : memref<808x96xf32, #tpu.memory_space<vmem>>, vector<1x4xf32>
    %c0_16 = arith.constant 0 : index
    %c0_17 = arith.constant 0 : index
    %c0_18 = arith.constant 0 : index
    %16 = vector.load %arg0[%c0_16, %c0_17, %c0_18] : memref<2x16x16xf32, #tpu.memory_space<vmem>>, vector<1x16x16xf32>
    %17 = vector.shape_cast %16 : vector<1x16x16xf32> to vector<16x16xf32>
    %c1 = arith.constant 1 : index
    %c0_19 = arith.constant 0 : index
    %c0_20 = arith.constant 0 : index
    %18 = vector.load %arg0[%c1, %c0_19, %c0_20] : memref<2x16x16xf32, #tpu.memory_space<vmem>>, vector<1x16x16xf32>
    %19 = vector.shape_cast %18 : vector<1x16x16xf32> to vector<16x16xf32>
    %20 = tpu.concatenate %17, %19 in 0 : vector<16x16xf32>, vector<16x16xf32> -> vector<32x16xf32>
    "tpu.trace_start"() <{level = 10 : i32, message = "nd,md->nm"}> : () -> ()
    %cst = arith.constant dense<0.000000e+00> : vector<32x32xf32>
    %21 = tpu.matmul %20, %20, %cst {dimension_numbers = #tpu.dot_dimension_numbers<[1], [1], [0], [0], [0, 0, 1, 0], [], []>} : vector<32x16xf32>, vector<32x16xf32>, vector<32x32xf32> -> vector<32x32xf32>
    "tpu.trace_stop"() : () -> ()
    %22 = arith.addf %21, %6 : vector<32x32xf32>
    %cst_21 = arith.constant dense<0xFF800000> : vector<32xf32>
    %23 = vector.multi_reduction <maximumf>, %22, %cst_21 [0] : vector<32x32xf32> to vector<32xf32>
    %24 = vector.shape_cast %23 : vector<32xf32> to vector<1x32xf32>
    %25 = vector.broadcast %24 : vector<1x32xf32> to vector<32x32xf32>
    %26 = arith.subf %22, %25 : vector<32x32xf32>
    %27 = math.exp %26 : vector<32x32xf32>
    %cst_22 = arith.constant dense<0.000000e+00> : vector<32xf32>
    %28 = vector.multi_reduction <add>, %27, %cst_22 [0] : vector<32x32xf32> to vector<32xf32>
    %29 = vector.shape_cast %28 : vector<32xf32> to vector<1x32xf32>
    %30 = tpu.reciprocal %29 {approx = true} : vector<1x32xf32> -> vector<1x32xf32>
    %31 = vector.broadcast %30 : vector<1x32xf32> to vector<32x32xf32>
    %32 = arith.mulf %27, %31 : vector<32x32xf32>
    %cst_23 = arith.constant dense<0.000000e+00> : vector<32x16xf32>
    %33 = tpu.matmul %32, %20, %cst_23 {dimension_numbers = #tpu.dot_dimension_numbers<[1], [0], [0], [1], [0, 0, 1, 1], [], []>} : vector<32x32xf32>, vector<32x16xf32>, vector<32x16xf32> -> vector<32x16xf32>
    %34 = tpu.concatenate %33, %20 in 1 : vector<32x16xf32>, vector<32x16xf32> -> vector<32x32xf32>
    %cst_24 = arith.constant dense<0.000000e+00> : vector<32x16xf32>
    %35 = tpu.matmul %34, %0, %cst_24 {dimension_numbers = #tpu.dot_dimension_numbers<[1], [0], [0], [1], [0, 0, 1, 1], [], []>} : vector<32x32xf32>, vector<32x16xf32>, vector<32x16xf32> -> vector<32x16xf32>
    %36 = vector.broadcast %9 : vector<1x16xf32> to vector<32x16xf32>
    %37 = arith.addf %35, %36 : vector<32x16xf32>
    %38 = math.tanh %37 : vector<32x16xf32>
    %39 = vector.extract_strided_slice %38 {offsets = [0, 0], sizes = [16, 16], strides = [1, 1]} : vector<32x16xf32> to vector<16x16xf32>
    %c0_25 = arith.constant 0 : index
    %c0_26 = arith.constant 0 : index
    %c0_27 = arith.constant 0 : index
    %40 = vector.load %arg1[%c0_25, %c0_26, %c0_27] : memref<2x16x16xf32, #tpu.memory_space<vmem>>, vector<1x16x16xf32>
    %41 = vector.shape_cast %40 : vector<1x16x16xf32> to vector<16x16xf32>
    %42 = vector.extract_strided_slice %38 {offsets = [16, 0], sizes = [16, 16], strides = [1, 1]} : vector<32x16xf32> to vector<16x16xf32>
    %c1_28 = arith.constant 1 : index
    %c0_29 = arith.constant 0 : index
    %c0_30 = arith.constant 0 : index
    %43 = vector.load %arg1[%c1_28, %c0_29, %c0_30] : memref<2x16x16xf32, #tpu.memory_space<vmem>>, vector<1x16x16xf32>
    %44 = vector.shape_cast %43 : vector<1x16x16xf32> to vector<16x16xf32>
    %45 = tpu.concatenate %39, %39, %41, %42, %42, %44 in 1 : vector<16x16xf32>, vector<16x16xf32>, vector<16x16xf32>, vector<16x16xf32>, vector<16x16xf32>, vector<16x16xf32> -> vector<16x96xf32>
    %46 = vector.extract_strided_slice %45 {offsets = [0, 0], sizes = [14, 96], strides = [1, 1]} : vector<16x96xf32> to vector<14x96xf32>
    %47 = vector.extract_strided_slice %45 {offsets = [1, 0], sizes = [14, 96], strides = [1, 1]} : vector<16x96xf32> to vector<14x96xf32>
    %48 = vector.extract_strided_slice %45 {offsets = [2, 0], sizes = [14, 96], strides = [1, 1]} : vector<16x96xf32> to vector<14x96xf32>
    %49 = tpu.concatenate %46, %47, %48 in 1 : vector<14x96xf32>, vector<14x96xf32>, vector<14x96xf32> -> vector<14x288xf32>
    %cst_31 = arith.constant dense<0.000000e+00> : vector<14x96xf32>
    %50 = tpu.matmul %49, %1, %cst_31 {dimension_numbers = #tpu.dot_dimension_numbers<[1], [0], [0], [1], [0, 0, 1, 1], [], []>} : vector<14x288xf32>, vector<288x96xf32>, vector<14x96xf32> -> vector<14x96xf32>
    %51 = vector.broadcast %10 : vector<1x96xf32> to vector<14x96xf32>
    %52 = arith.addf %50, %51 : vector<14x96xf32>
    %cst_32 = arith.constant dense<0.000000e+00> : vector<96xf32>
    %53 = vector.multi_reduction <add>, %52, %cst_32 [0] : vector<14x96xf32> to vector<96xf32>
    %54 = vector.shape_cast %53 : vector<96xf32> to vector<1x96xf32>
    %55 = arith.mulf %52, %52 : vector<14x96xf32>
    %cst_33 = arith.constant dense<0.000000e+00> : vector<96xf32>
    %56 = vector.multi_reduction <add>, %55, %cst_33 [0] : vector<14x96xf32> to vector<96xf32>
    %57 = vector.shape_cast %56 : vector<96xf32> to vector<1x96xf32>
    %58 = tpu.concatenate %54, %57 in 0 : vector<1x96xf32>, vector<1x96xf32> -> vector<2x96xf32>
    %cst_34 = arith.constant dense<0.000000e+00> : vector<2x48xf32>
    %59 = tpu.matmul %58, %5, %cst_34 {dimension_numbers = #tpu.dot_dimension_numbers<[1], [0], [0], [1], [0, 0, 1, 1], [], []>} : vector<2x96xf32>, vector<96x48xf32>, vector<2x48xf32> -> vector<2x48xf32>
    %cst_35 = arith.constant 0.0357142873 : f32
    %60 = vector.broadcast %cst_35 : f32 to vector<2x48xf32>
    %61 = arith.mulf %59, %60 : vector<2x48xf32>
    %62 = vector.extract_strided_slice %61 {offsets = [0, 0], sizes = [1, 48], strides = [1, 1]} : vector<2x48xf32> to vector<1x48xf32>
    %63 = vector.extract_strided_slice %61 {offsets = [1, 0], sizes = [1, 48], strides = [1, 1]} : vector<2x48xf32> to vector<1x48xf32>
    %64 = arith.mulf %62, %62 : vector<1x48xf32>
    %65 = arith.subf %63, %64 : vector<1x48xf32>
    %cst_36 = arith.constant 0.000000e+00 : f32
    %66 = vector.broadcast %cst_36 : f32 to vector<1x48xf32>
    %67 = arith.maximumf %65, %66 : vector<1x48xf32>
    %cst_37 = arith.constant 9.99999974E-6 : f32
    %68 = vector.broadcast %cst_37 : f32 to vector<1x48xf32>
    %69 = arith.addf %67, %68 : vector<1x48xf32>
    %70 = math.rsqrt %69 : vector<1x48xf32>
    %71 = arith.mulf %11, %70 : vector<1x48xf32>
    %72 = arith.mulf %62, %71 : vector<1x48xf32>
    %73 = arith.subf %12, %72 : vector<1x48xf32>
    %74 = tpu.concatenate %71, %71 in 1 : vector<1x48xf32>, vector<1x48xf32> -> vector<1x96xf32>
    %75 = tpu.concatenate %73, %73 in 1 : vector<1x48xf32>, vector<1x48xf32> -> vector<1x96xf32>
    %76 = vector.broadcast %74 : vector<1x96xf32> to vector<14x96xf32>
    %77 = arith.mulf %52, %76 : vector<14x96xf32>
    %78 = vector.broadcast %75 : vector<1x96xf32> to vector<14x96xf32>
    %79 = arith.addf %77, %78 : vector<14x96xf32>
    %cst_38 = arith.constant 0.000000e+00 : f32
    %80 = vector.broadcast %cst_38 : f32 to vector<14x96xf32>
    %81 = arith.maximumf %79, %80 : vector<14x96xf32>
    %82 = vector.extract_strided_slice %81 {offsets = [0, 0], sizes = [12, 96], strides = [1, 1]} : vector<14x96xf32> to vector<12x96xf32>
    %83 = vector.extract_strided_slice %81 {offsets = [1, 0], sizes = [12, 96], strides = [1, 1]} : vector<14x96xf32> to vector<12x96xf32>
    %84 = arith.maximumf %82, %83 : vector<12x96xf32>
    %85 = vector.extract_strided_slice %81 {offsets = [2, 0], sizes = [12, 96], strides = [1, 1]} : vector<14x96xf32> to vector<12x96xf32>
    %86 = arith.maximumf %84, %85 : vector<12x96xf32>
    %cst_39 = arith.constant dense<0.000000e+00> : vector<6x96xf32>
    %87 = tpu.matmul %7, %86, %cst_39 {dimension_numbers = #tpu.dot_dimension_numbers<[1], [0], [0], [1], [0, 0, 1, 1], [], []>} : vector<6x12xf32>, vector<12x96xf32>, vector<6x96xf32> -> vector<6x96xf32>
    %cst_40 = arith.constant dense<0.000000e+00> : vector<6x96xf32>
    %88 = tpu.matmul %87, %2, %cst_40 {dimension_numbers = #tpu.dot_dimension_numbers<[1], [0], [0], [1], [0, 0, 1, 1], [], []>} : vector<6x96xf32>, vector<96x96xf32>, vector<6x96xf32> -> vector<6x96xf32>
    %89 = vector.broadcast %13 : vector<1x96xf32> to vector<6x96xf32>
    %90 = arith.addf %88, %89 : vector<6x96xf32>
    %cst_41 = arith.constant dense<0.000000e+00> : vector<96xf32>
    %91 = vector.multi_reduction <add>, %90, %cst_41 [0] : vector<6x96xf32> to vector<96xf32>
    %92 = vector.shape_cast %91 : vector<96xf32> to vector<1x96xf32>
    %93 = arith.mulf %90, %90 : vector<6x96xf32>
    %cst_42 = arith.constant dense<0.000000e+00> : vector<96xf32>
    %94 = vector.multi_reduction <add>, %93, %cst_42 [0] : vector<6x96xf32> to vector<96xf32>
    %95 = vector.shape_cast %94 : vector<96xf32> to vector<1x96xf32>
    %96 = tpu.concatenate %92, %95 in 0 : vector<1x96xf32>, vector<1x96xf32> -> vector<2x96xf32>
    %cst_43 = arith.constant dense<0.000000e+00> : vector<2x48xf32>
    %97 = tpu.matmul %96, %5, %cst_43 {dimension_numbers = #tpu.dot_dimension_numbers<[1], [0], [0], [1], [0, 0, 1, 1], [], []>} : vector<2x96xf32>, vector<96x48xf32>, vector<2x48xf32> -> vector<2x48xf32>
    %cst_44 = arith.constant 0.0833333358 : f32
    %98 = vector.broadcast %cst_44 : f32 to vector<2x48xf32>
    %99 = arith.mulf %97, %98 : vector<2x48xf32>
    %100 = vector.extract_strided_slice %99 {offsets = [0, 0], sizes = [1, 48], strides = [1, 1]} : vector<2x48xf32> to vector<1x48xf32>
    %101 = vector.extract_strided_slice %99 {offsets = [1, 0], sizes = [1, 48], strides = [1, 1]} : vector<2x48xf32> to vector<1x48xf32>
    %102 = arith.mulf %100, %100 : vector<1x48xf32>
    %103 = arith.subf %101, %102 : vector<1x48xf32>
    %cst_45 = arith.constant 0.000000e+00 : f32
    %104 = vector.broadcast %cst_45 : f32 to vector<1x48xf32>
    %105 = arith.maximumf %103, %104 : vector<1x48xf32>
    %cst_46 = arith.constant 9.99999974E-6 : f32
    %106 = vector.broadcast %cst_46 : f32 to vector<1x48xf32>
    %107 = arith.addf %105, %106 : vector<1x48xf32>
    %108 = math.rsqrt %107 : vector<1x48xf32>
    %109 = arith.mulf %11, %108 : vector<1x48xf32>
    %110 = arith.mulf %100, %109 : vector<1x48xf32>
    %111 = arith.subf %12, %110 : vector<1x48xf32>
    %112 = tpu.concatenate %109, %109 in 1 : vector<1x48xf32>, vector<1x48xf32> -> vector<1x96xf32>
    %113 = tpu.concatenate %111, %111 in 1 : vector<1x48xf32>, vector<1x48xf32> -> vector<1x96xf32>
    %114 = vector.broadcast %112 : vector<1x96xf32> to vector<6x96xf32>
    %115 = arith.mulf %90, %114 : vector<6x96xf32>
    %116 = vector.broadcast %113 : vector<1x96xf32> to vector<6x96xf32>
    %117 = arith.addf %115, %116 : vector<6x96xf32>
    %cst_47 = arith.constant 0.000000e+00 : f32
    %118 = vector.broadcast %cst_47 : f32 to vector<6x96xf32>
    %119 = arith.maximumf %117, %118 : vector<6x96xf32>
    %120 = vector.extract_strided_slice %119 {offsets = [0, 0], sizes = [5, 96], strides = [1, 1]} : vector<6x96xf32> to vector<5x96xf32>
    %121 = vector.extract_strided_slice %119 {offsets = [1, 0], sizes = [5, 96], strides = [1, 1]} : vector<6x96xf32> to vector<5x96xf32>
    %122 = arith.maximumf %120, %121 : vector<5x96xf32>
    %cst_48 = arith.constant dense<0.000000e+00> : vector<3x96xf32>
    %123 = tpu.matmul %8, %122, %cst_48 {dimension_numbers = #tpu.dot_dimension_numbers<[1], [0], [0], [1], [0, 0, 1, 1], [], []>} : vector<3x5xf32>, vector<5x96xf32>, vector<3x96xf32> -> vector<3x96xf32>
    %cst_49 = arith.constant dense<0.000000e+00> : vector<3x4xf32>
    %124 = tpu.matmul %123, %3, %cst_49 {dimension_numbers = #tpu.dot_dimension_numbers<[1], [0], [0], [1], [0, 0, 1, 1], [], []>} : vector<3x96xf32>, vector<96x4xf32>, vector<3x4xf32> -> vector<3x4xf32>
    %125 = vector.broadcast %14 : vector<1x4xf32> to vector<3x4xf32>
    %126 = arith.addf %124, %125 : vector<3x4xf32>
    %cst_50 = arith.constant dense<0.000000e+00> : vector<3x4xf32>
    %127 = tpu.matmul %123, %4, %cst_50 {dimension_numbers = #tpu.dot_dimension_numbers<[1], [0], [0], [1], [0, 0, 1, 1], [], []>} : vector<3x96xf32>, vector<96x4xf32>, vector<3x4xf32> -> vector<3x4xf32>
    %128 = vector.broadcast %15 : vector<1x4xf32> to vector<3x4xf32>
    %129 = arith.addf %127, %128 : vector<3x4xf32>
    %130 = arith.mulf %126, %129 : vector<3x4xf32>
    %cst_51 = arith.constant dense<0.000000e+00> : vector<4xf32>
    %131 = vector.multi_reduction <add>, %130, %cst_51 [0] : vector<3x4xf32> to vector<4xf32>
    %132 = vector.shape_cast %131 : vector<4xf32> to vector<1x4xf32>
    %cst_52 = arith.constant 3.000000e+00 : f32
    %133 = vector.broadcast %cst_52 : f32 to vector<1x4xf32>
    %134 = arith.divf %132, %133 : vector<1x4xf32>
    %cst_53 = arith.constant 0.000000e+00 : f32
    %135 = vector.broadcast %cst_53 : f32 to vector<1x4xf32>
    %136 = arith.subf %135, %134 : vector<1x4xf32>
    %137 = math.exp %136 : vector<1x4xf32>
    %cst_54 = arith.constant 1.000000e+00 : f32
    %138 = vector.broadcast %cst_54 : f32 to vector<1x4xf32>
    %139 = arith.addf %138, %137 : vector<1x4xf32>
    %cst_55 = arith.constant 1.000000e+00 : f32
    %140 = vector.broadcast %cst_55 : f32 to vector<1x4xf32>
    %141 = arith.divf %140, %139 : vector<1x4xf32>
    %c0_56 = arith.constant 0 : index
    %c0_57 = arith.constant 0 : index
    %142 = vector.load %arg3[%c0_56, %c0_57] : memref<1x4xf32, #tpu.memory_space<vmem>>, vector<1x4xf32>
    tpu.vector_store %arg3[%c0_56, %c0_57], %141 {strides = array<i32>} : memref<1x4xf32, #tpu.memory_space<vmem>>, vector<1x4xf32>,
    return
  }
}

</mosaic_0001>

<bundles_post_ra>
// kernel: attn_mvul_forward.1
= control target key start
LH: loop header
LB: loop body
LE: loop exit
PB: predicated region body
PF: predicated region fallthrough
CT: control target
= control target key end

     0   :  { %vm120_vm0 = vcmask 130048   ;;  %s1980_s23 = smov 16   ;;  %vm218_vm2 = vcmask 261120   ;;  %s1981_s13 = smov 32   ;;  %vm527_vm3 = vcmask 392192   ;;  %vm530_vm4 = vcmask 523264   ;;  %s2531_s0 = inlined_call_operand.vmem [shape: f32[2,16,16], index: 0, kind: input, shape index: {}]   ;;  %s2532_s2 = inlined_call_operand.vmem [shape: f32[808,96], index: 2, kind: input, shape index: {}]   ;;  %s2533_s1 = inlined_call_operand.vmem [shape: f32[2,16,16], index: 1, kind: input, shape index: {}]   ;;  %s2534_s3 = inlined_call_operand.vmem [shape: f32[1,4], index: 3, kind: output, shape index: {}]  }
   0x1   :  { %v115_v0 = vld [vmem:[%s2531_s0] sm:$0xff]  ;;  %v116_v1 = vld [vmem:[%s2531_s0 + $0x8] sm:$0xff]  ;;  %vm1783_vm1 = vmpackc.low %vm120_vm0, %vm120_vm0  ;;  %s1982_s16 = smov 48   ;;  %s1983_s19 = smov 64   ;;  %vm533_vm5 = vcmask 654336   ;;  %vm548_vm6 = vcmask 1045504  }
   0x2   :  { %v1782_v2 = vpack.c.bf16 %v116_v1, %v115_v0  ;;  %v1408_v3 = vld [vmem:[%s2531_s0 + $0x10] sm:$0xff]  ;;  %v1409_v4 = vld [vmem:[%s2531_s0 + $0x18] sm:$0xff]  ;;  %1590 = vmatprep.mubr.msk.f32.mxu0 %vm120_vm0, %v115_v0  ;;  %v14_v6 = vld [vmem:[%s2532_s2] sm:$0xff]  ;;  %359 = vrot.lane.b32.xlu0 %v115_v0, %s1980_s23  ;;  %vm538_vm7 = vcmask 1046528   ;;  %s1985_s12 = smov 96   ;;  %vm558_vm8 = vcmask 785408  }
   0x3   :  { %v1788_v5 = vpack.c.bf16 %v1409_v4, %v1408_v3  ;;  %v15_v7 = vld [vmem:[%s2532_s2 + $0x8] sm:$0xff]  ;;  %363 = vrot.lane.b32.xlu1 %v1408_v3, %s1980_s23  ;;  %v102_v10 = vld [vmem:[%s2532_s2 + $0x2c0] sm:$0xff]  ;;  %v105_v15 = vld [vmem:[%s2532_s2 + $0x2d8] sm:$0xff]  ;;  %vm1987_vm9 = vmmov 0   ;;  %vm722_vm10 = vcmask 783360   ;;  %vm742_vm11 = vcmask 1040384  }
   0x4   :  { %1784 = vmatprep.subr.msk.bf16.mxu0 %vm1783_vm1, %v1782_v2  ;;  %1795 = vmatprep.subr.bf16.mxu1 %v1782_v2  ;;  %v2036_v8 = vpack.c.bf16 %v15_v7, %v14_v6  ;;  %v103_v9 = vld [vmem:[%s2532_s2 + $0x2c8] sm:$0xff]  ;;  %v104_v17 = vld [vmem:[%s2532_s2 + $0x2d0] sm:$0xff]  ;;  %vm876_vm12 = vcmask 1043456   ;;  %vm1989_vm13 = vmmov 1   ;;  %vm872_vm15 = vcmask 97280  }
   0x5   :  { %1787 = vmatpush3.bf16.xpose.msk.msra.mxu0 %vm1783_vm1, %v1782_v2  ;;  %1797 = vmatpush3.bf16.msra.mxu1 %v1782_v2  ;;  %v16_v0 = vld [vmem:[%s2532_s2 + $0x10] sm:$0xff]  ;;  %vm1870_vm14 = vmpackc.low %vm876_vm12, %vm1989_vm13 }
   0x6   :  { %1790 = vmatprep.subr.msk.bf16.mxu0 %vm1783_vm1, %v1788_v5  ;;  %1799 = vmatprep.subr.bf16.mxu1 %v1788_v5 }
   0x7   :  { %361 = vrot.lane.b32.xlu0 %v116_v1, %s1980_s23  ;;  %365 = vrot.lane.b32.xlu1 %v1409_v4, %s1980_s23 }
   0x9   :  { %1801 = vmatpush3.bf16.msra.mxu1 %v1788_v5 }
   0xa   :  { %1803 = vmatprep.subr.bf16.mxu1 %v2036_v8 }
   0xd   :  { %1793 = vmatpush3.bf16.xpose.msk.msra.mxu0 %vm1783_vm1, %v1788_v5  ;;  %vm1156_vm1 = vcmask 39936  }
  0x14   :  { %1591 = vmatmul.mubr.msk.f32.vlgmr.msra.gmra.mrb[0].mxu0 %vm120_vm0, %v116_v1  ;;  %v17_v1 = vld [vmem:[%s2532_s2 + $0x18] sm:$0xff] }
  0x15   :  { %1593 = vmatprep.mubr.msk.f32.mxu0 %vm120_vm0, %v1408_v3  ;;  %v1806_v2 = vpack.c.bf16 %v17_v1, %v16_v0  ;;  %v44_v0 = vld [vmem:[%s2532_s2 + $0xf0] sm:$0xff]  ;;  %v45_v1 = vld [vmem:[%s2532_s2 + $0xf8] sm:$0xff] }
  0x18   :  { %1594 = vmatmul.mubr.msk.f32.gmra.mrb[2].mxu0 %vm120_vm0, %v1409_v4 }
  0x74   :  { %v360_v3 = vpop.permute.xlu0 %359 }
  0x75   :  { %v364_v4 = vpop.permute.xlu1 %363 }
  0x79   :  { %v362_v5 = vpop.permute.xlu0 %361 }
  0xe7   :  { %v1592_v11 = vpop.f32.mrb[0].mxu0 }
  0xe8   :  { %v205_v12 = vadd.f32 %v1592_v11, %v103_v9  ;;  %v199_v13 = vpop.f32.mrb[1].mxu0 }
  0xe9   :  { %v200_v14 = vadd.f32 %v199_v13, %v102_v10  ;;  %v366_v10 = vpop.permute.xlu1 %365 }
  0xea   :  { %v220_v16 = vsel %vm218_vm2, %v205_v12, -inf }
  0xeb   :  { %v219_v18 = vsel %vm218_vm2, %v200_v14, -inf  ;;  %v1595_v19 = vpop.f32.mrb[2].mxu0 }
  0xec   :  { %v223_v20 = vmax.f32 %v219_v18, %v220_v16  ;;  %v215_v21 = vadd.f32 %v1595_v19, %v105_v15  ;;  %v209_v22 = vpop.f32.mrb[3].mxu0  ;;  %v481_v15 = vld [vmem:[%s2533_s1 + $0x8] sm:$0xff]  ;;  %v480_v16 = vld [vmem:[%s2533_s1] sm:$0xff] }
  0xed   :  { %v210_v23 = vadd.f32 %v209_v22, %v104_v17  ;;  %497 = vrot.lane.b32.xlu1 %v481_v15, %s1981_s13  ;;  %495 = vrot.lane.b32.xlu0 %v480_v16, %s1981_s13  ;;  %v1422_v17 = vld [vmem:[%s2532_s2 + $0x2f0] ss:$0 sm:$0xff]  ;;  %s1984_s13 = smov 80  }
  0xee   :  { %v222_v24 = vsel %vm218_vm2, %v215_v21, -inf  ;;  %v32_v16 = vld [vmem:[%s2532_s2 + $0x90] sm:$0xff] }
  0xef   :  { %v221_v25 = vsel %vm218_vm2, %v210_v23, -inf }
  0xf0   :  { %v224_v26 = vmax.f32 %v221_v25, %v222_v24 }
  0xf2   :  { %v225_v27 = vmax.f32 %v223_v20, %v224_v26 }
  0xf4   :  { %v226_v28 = vrot.slane %v225_v27, 4 }
  0xf6   :  { %v227_v29 = vmax.f32 %v225_v27, %v226_v28 }
  0xf8   :  { %v228_v30 = vrot.slane %v227_v29, 2 }
  0xfa   :  { %v229_v31 = vmax.f32 %v227_v29, %v228_v30  ;;  %v1428_v30 = vld [vmem:[%s2533_s1 + $0x18] sm:$0xff] }
  0xfc   :  { %v230_v32 = vrot.slane %v229_v31, 1 }
  0xfe   :  { %v231_v33 = vmax.f32 %v229_v31, %v230_v32  ;;  %v1427_v31 = vld [vmem:[%s2533_s1 + $0x10] sm:$0xff]  ;;  %v34_v32 = vld [vmem:[%s2532_s2 + $0xa0] sm:$0xff] }
 0x100   :  { %v233_v34 = vsub.f32 %v205_v12, %v231_v33  ;;  %v234_v35 = vsub.f32 %v210_v23, %v231_v33  ;;  %v235_v36 = vsub.f32 %v215_v21, %v231_v33  ;;  %v232_v37 = vsub.f32 %v200_v14, %v231_v33  ;;  %v35_v33 = vld [vmem:[%s2532_s2 + $0xa8] sm:$0xff] }
 0x102   :  { %v238_v38 = vmul.f32 1.442695, %v233_v34  ;;  %v240_v39 = vmul.f32 1.442695, %v234_v35  ;;  %v236_v40 = vmul.f32 1.442695, %v232_v37  ;;  %v1810_v35 = vpack.c.bf16 %v35_v33, %v34_v32 }
 0x103   :  { %v242_v41 = vmul.f32 1.442695, %v235_v36  ;;  %v18_v34 = vld [vmem:[%s2532_s2 + $0x20] sm:$0xff]  ;;  %v19_v36 = vld [vmem:[%s2532_s2 + $0x28] sm:$0xff]  ;;  %v36_v37 = vld [vmem:[%s2532_s2 + $0xb0] sm:$0xff] }
 0x104   :  { %1954 = vpow2.f32 %v238_v38  ;;  %v37_v38 = vld [vmem:[%s2532_s2 + $0xb8] sm:$0xff]  ;;  %1811 = vmatprep.subr.bf16.mxu0 %v1810_v35 }
 0x105   :  { %1956 = vpow2.f32 %v240_v39  ;;  %v1812_v39 = vpack.c.bf16 %v19_v36, %v18_v34 }
 0x106   :  { %1958 = vpow2.f32 %v236_v40  ;;  %v1814_v40 = vpack.c.bf16 %v37_v38, %v36_v37 }
 0x107   :  { %1960 = vpow2.f32 %v242_v41  ;;  %v20_v41 = vld [vmem:[%s2532_s2 + $0x30] sm:$0xff]  ;;  %1813 = vmatpush3.bf16.msra.mxu0 %v1812_v39 }
 0x108   :  { %1815 = vmatprep.subr.bf16.mxu0 %v1814_v40 }
 0x10e   :  { %v1955_v42 = vpop.eup %1954 }
 0x10f   :  { %v1957_v43 = vpop.eup %1956  ;;  %v245_v44 = vsel %vm218_vm2, %v1955_v42, 0.0 }
 0x110   :  { %v1959_v45 = vpop.eup %1958  ;;  %v247_v49 = vsel %vm218_vm2, %v1957_v43, 0.0 }
 0x111   :  { %v244_v46 = vsel %vm218_vm2, %v1959_v45, 0.0  ;;  %v1961_v47 = vpop.eup %1960 }
 0x112   :  { %v246_v48 = vadd.f32 %v245_v44, %v244_v46  ;;  %v249_v51 = vsel %vm218_vm2, %v1961_v47, 0.0  ;;  %v39_v44 = vld [vmem:[%s2532_s2 + $0xc8] sm:$0xff] }
 0x114   :  { %v248_v50 = vadd.f32 %v247_v49, %v246_v48  ;;  %v23_v48 = vld [vmem:[%s2532_s2 + $0x48] sm:$0xff]  ;;  %v40_v49 = vld [vmem:[%s2532_s2 + $0xd0] sm:$0xff] }
 0x116   :  { %v250_v52 = vadd.f32 %v249_v51, %v248_v50  ;;  %v41_v50 = vld [vmem:[%s2532_s2 + $0xd8] sm:$0xff] }
 0x118   :  { %v251_v53 = vrot.slane %v250_v52, 4 }
 0x11a   :  { %v252_v54 = vadd.f32 %v251_v53, %v250_v52  ;;  %v24_v52 = vld [vmem:[%s2532_s2 + $0x50] sm:$0xff]  ;;  %v1822_v53 = vpack.c.bf16 %v41_v50, %v40_v49 }
 0x11c   :  { %v253_v55 = vrot.slane %v252_v54, 2 }
 0x11e   :  { %v254_v56 = vadd.f32 %v253_v55, %v252_v54  ;;  %v25_v54 = vld [vmem:[%s2532_s2 + $0x58] sm:$0xff]  ;;  %v50_v55 = vld [vmem:[%s2532_s2 + $0x120] sm:$0xff] }
 0x120   :  { %v255_v57 = vrot.slane %v254_v56, 1 }
 0x122   :  { %v256_v58 = vadd.f32 %v255_v57, %v254_v56  ;;  %v51_v56 = vld [vmem:[%s2532_s2 + $0x128] sm:$0xff]  ;;  %v42_v57 = vld [vmem:[%s2532_s2 + $0xe0] sm:$0xff] }
 0x124   :  { %1962 = vrcp.f32 %v256_v58  ;;  %v43_v58 = vld [vmem:[%s2532_s2 + $0xe8] sm:$0xff] }
 0x12e   :  { %v1963_v59 = vpop.eup %1962 }
 0x12f   :  { %v258_v60 = vmul.f32 %v1963_v59, %v1959_v45  ;;  %v259_v61 = vmul.f32 %v1963_v59, %v1955_v42  ;;  %v260_v62 = vmul.f32 %v1963_v59, %v1957_v43  ;;  %v261_v63 = vmul.f32 %v1963_v59, %v1961_v47  ;;  %v21_v42 = vld [vmem:[%s2532_s2 + $0x38] sm:$0xff]  ;;  %v38_v43 = vld [vmem:[%s2532_s2 + $0xc0] sm:$0xff] }
 0x130   :  { %v1816_v45 = vpack.c.bf16 %v21_v42, %v20_v41  ;;  %v1818_v46 = vpack.c.bf16 %v39_v44, %v38_v43  ;;  %v22_v47 = vld [vmem:[%s2532_s2 + $0x40] sm:$0xff]  ;;  %v1842_v59 = vpack.c.bf16 %v51_v56, %v50_v55 }
 0x131   :  { %1604 = vmatprep.mubr.msk.f32.mxu1 %vm218_vm2, %v258_v60  ;;  %v1820_v51 = vpack.c.bf16 %v23_v48, %v22_v47  ;;  %v1824_v60 = vpack.c.bf16 %v25_v54, %v24_v52  ;;  %v90_v56 = vld [vmem:[%s2532_s2 + $0x260] sm:$0xff] }
 0x132   :  { %1605 = vmatmul.mubr.msk.f32.vlgmr.msra.gmra.mrb[0].mxu1 %vm218_vm2, %v259_v61  ;;  %1817 = vmatpush3.bf16.msra.mxu0 %v1816_v45  ;;  %v1826_v61 = vpack.c.bf16 %v43_v58, %v42_v57  ;;  %v91_v57 = vld [vmem:[%s2532_s2 + $0x268] sm:$0xff] }
 0x133   :  { %1607 = vmatprep.mubr.msk.f32.mxu1 %vm218_vm2, %v260_v62  ;;  %1805 = vmatpush3.bf16.msra.mxu1 %v2036_v8  ;;  %v26_v62 = vld [vmem:[%s2532_s2 + $0x60] sm:$0xff]  ;;  %v2241_v58 = vpack.c.bf16 %v91_v57, %v90_v56 }
 0x134   :  { %1807 = vmatprep.subr.bf16.mxu1 %v1806_v2  ;;  %1819 = vmatprep.subr.bf16.mxu0 %v1818_v46 }
 0x136   :  { %1608 = vmatmul.mubr.msk.f32.gmra.mrb[2].mxu1 %vm218_vm2, %v261_v63  ;;  %1821 = vmatpush3.bf16.msra.mxu0 %v1820_v51  ;;  %v27_v63 = vld [vmem:[%s2532_s2 + $0x68] sm:$0xff] }
 0x137   :  { %1809 = vmatpush3.bf16.msra.mxu1 %v1806_v2  ;;  %1823 = vmatprep.subr.bf16.mxu0 %v1822_v53  ;;  %v1828_v2 = vpack.c.bf16 %v27_v63, %v26_v62  ;;  %v94_v63 = vld [vmem:[%s2532_s2 + $0x280] sm:$0xff] }
 0x138   :  { %1843 = vmatprep.subr.bf16.mxu1 %v1842_v59 }
 0x13a   :  { %1825 = vmatpush3.bf16.msra.mxu0 %v1824_v60  ;;  %v92_v60 = vld [vmem:[%s2532_s2 + $0x270] sm:$0xff] }
 0x13b   :  { %1827 = vmatprep.subr.bf16.mxu0 %v1826_v61  ;;  %v93_v61 = vld [vmem:[%s2532_s2 + $0x278] sm:$0xff] }
 0x13c   :  { %v2253_v62 = vpack.c.bf16 %v93_v61, %v92_v60  ;;  %v2331_v60 = vld [vmem:[%s2532_s2 + $0x308] sm:$0x1] }
 0x13e   :  { %1829 = vmatpush3.bf16.msra.mxu0 %v1828_v2  ;;  %v96_v2 = vld [vmem:[%s2532_s2 + $0x290] sm:$0xff] }
 0x205   :  { %v1606_v6 = vpop.f32.mrb[0].mxu1 }
 0x206   :  { %v340_v7 = vpop.f32.mrb[1].mxu1  ;;  %v372_v9 = vsel %vm120_vm0, %v1606_v6, %v362_v5  ;;  %v29_v5 = vld [vmem:[%s2532_s2 + $0x78] sm:$0xff]  ;;  %v46_v6 = vld [vmem:[%s2532_s2 + $0x100] sm:$0xff] }
 0x207   :  { %v371_v8 = vsel %vm120_vm0, %v340_v7, %v360_v3  ;;  %v1830_v3 = vpack.c.bf16 %v45_v1, %v44_v0  ;;  %v47_v7 = vld [vmem:[%s2532_s2 + $0x108] sm:$0xff] }
 0x208   :  { %1618 = vmatprep.mubr.msk.f32.mxu1 %vm218_vm2, %v371_v8  ;;  %v95_v0 = vld [vmem:[%s2532_s2 + $0x288] sm:$0xff] }
 0x209   :  { %v1609_v11 = vpop.f32.mrb[2].mxu1  ;;  %1619 = vmatmul.mubr.msk.f32.vlgmr.msra.gmra.mrb[4].mxu1 %vm218_vm2, %v372_v9  ;;  %1831 = vmatprep.subr.bf16.mxu0 %v1830_v3  ;;  %v1834_v9 = vpack.c.bf16 %v47_v7, %v46_v6  ;;  %v2263_v1 = vpack.c.bf16 %v95_v0, %v94_v63  ;;  %v97_v3 = vld [vmem:[%s2532_s2 + $0x298] sm:$0xff]  ;;  %v99_v6 = vld [vmem:[%s2532_s2 + $0x2a8] sm:$0xff]  ;;  %v54_v0 = vld [vmem:[%s2532_s2 + $0x140] sm:$0xff] }
 0x20a   :  { %v350_v12 = vpop.f32.mrb[3].mxu1  ;;  %v374_v14 = vsel %vm120_vm0, %v1609_v11, %v366_v10  ;;  %1845 = vmatpush3.bf16.msra.mxu1 %v1842_v59  ;;  %v30_v10 = vld [vmem:[%s2532_s2 + $0x80] sm:$0xff]  ;;  %v31_v11 = vld [vmem:[%s2532_s2 + $0x88] sm:$0xff]  ;;  %v1986_v59 = vmov 0.0|0.0  }
 0x20b   :  { %v373_v13 = vsel %vm120_vm0, %v350_v12, %v364_v4  ;;  %v28_v4 = vld [vmem:[%s2532_s2 + $0x70] sm:$0xff] }
 0x20c   :  { %1621 = vmatprep.mubr.msk.f32.mxu1 %vm218_vm2, %v373_v13  ;;  %v1832_v8 = vpack.c.bf16 %v29_v5, %v28_v4  ;;  %v48_v12 = vld [vmem:[%s2532_s2 + $0x110] sm:$0xff]  ;;  %v49_v13 = vld [vmem:[%s2532_s2 + $0x118] sm:$0xff]  ;;  %v2273_v4 = vpack.c.bf16 %v97_v3, %v96_v2  ;;  %v98_v5 = vld [vmem:[%s2532_s2 + $0x2a0] sm:$0xff] }
 0x20d   :  { %1622 = vmatmul.mubr.msk.f32.gmra.mrb[6].mxu1 %vm218_vm2, %v374_v14  ;;  %v1836_v14 = vpack.c.bf16 %v31_v11, %v30_v10  ;;  %v1838_v15 = vpack.c.bf16 %v49_v13, %v48_v12  ;;  %v2283_v7 = vpack.c.bf16 %v99_v6, %v98_v5  ;;  %v1988_v10 = vmov 0.0   ;;  %v55_v2 = vld [vmem:[%s2532_s2 + $0x148] sm:$0xff]  ;;  %v56_v3 = vld [vmem:[%s2532_s2 + $0x150] sm:$0xff]  ;;  %v57_v6 = vld [vmem:[%s2532_s2 + $0x158] sm:$0xff] }
 0x20e   :  { %1833 = vmatpush3.bf16.msra.mxu0 %v1832_v8  ;;  %v100_v8 = vld [vmem:[%s2532_s2 + $0x2b0] sm:$0xff]  ;;  %v1873_v5 = vpack.c.bf16 %v55_v2, %v54_v0 }
 0x20f   :  { %1835 = vmatprep.subr.bf16.mxu0 %v1834_v9  ;;  %v101_v9 = vld [vmem:[%s2532_s2 + $0x2b8] sm:$0xff] }
 0x210   :  { %v2296_v11 = vpack.c.bf16 %v101_v9, %v100_v8  ;;  %v1876_v8 = vpack.c.bf16 %v57_v6, %v56_v3  ;;  %v58_v9 = vld [vmem:[%s2532_s2 + $0x160] sm:$0xff] }
 0x212   :  { %1837 = vmatpush3.bf16.msra.mxu0 %v1836_v14  ;;  %v1429_v14 = vld [vmem:[%s2532_s2 + $0x2f8] ss:$0 sm:$0xff] }
 0x213   :  { %1839 = vmatprep.subr.bf16.mxu0 %v1838_v15 }
 0x2dc   :  { %v1620_v18 = vpop.f32.mrb[4].mxu1 }
 0x2dd   :  { %v463_v19 = vadd.f32 %v1620_v18, %v1422_v17  ;;  %v457_v20 = vpop.f32.mrb[5].mxu1 }
 0x2de   :  { %v458_v21 = vadd.f32 %v1422_v17, %v457_v20  ;;  %v496_v20 = vpop.permute.xlu0 %495 }
 0x2df   :  { %1964 = vtanh.f32 %v463_v19  ;;  %v498_v19 = vpop.permute.xlu1 %497 }
 0x2e0   :  { %1966 = vtanh.f32 %v458_v21  ;;  %v1623_v22 = vpop.f32.mrb[6].mxu1 }
 0x2e1   :  { %v473_v23 = vadd.f32 %v1623_v22, %v1422_v17  ;;  %v467_v24 = vpop.f32.mrb[7].mxu1 }
 0x2e2   :  { %v468_v25 = vadd.f32 %v1422_v17, %v467_v24  ;;  %v33_v17 = vld [vmem:[%s2532_s2 + $0x98] sm:$0xff] }
 0x2e3   :  { %1968 = vtanh.f32 %v473_v23  ;;  %v1840_v18 = vpack.c.bf16 %v33_v17, %v32_v16  ;;  %v52_v23 = vld [vmem:[%s2532_s2 + $0x130] sm:$0xff]  ;;  %v53_v24 = vld [vmem:[%s2532_s2 + $0x138] sm:$0xff] }
 0x2e4   :  { %1970 = vtanh.f32 %v468_v25  ;;  %v1846_v25 = vpack.c.bf16 %v53_v24, %v52_v23 }
 0x2e5   :  { %1841 = vmatpush3.bf16.msra.mxu0 %v1840_v18 }
 0x2e6   :  { %1847 = vmatprep.subr.bf16.mxu1 %v1846_v25  ;;  %1872 = vmatprep.subr.bf16.mxu0 %v1986_v59 }
 0x2e7   :  { %1849 = vmatpush3.bf16.msra.mxu1 %v1846_v25 }
 0x2e8   :  { %1850 = vmatprep.subr.bf16.mxu1 %v1986_v59 }
 0x2e9   :  { %v2089_v26 = vpop.eup %1964 }
 0x2ea   :  { %v2091_v27 = vpop.eup %1966  ;;  %489 = vrot.lane.b32.xlu1 %v2089_v26, %s1980_s23 }
 0x2eb   :  { %487 = vrot.lane.b32.xlu0 %v2091_v27, %s1980_s23 }
 0x2ed   :  { %v1969_v28 = vpop.eup %1968 }
 0x2ee   :  { %v1971_v29 = vpop.eup %1970  ;;  %505 = vrot.lane.b32.xlu1 %v1969_v28, %s1982_s16 }
 0x2ef   :  { %503 = vrot.lane.b32.xlu0 %v1971_v29, %s1982_s16 }
 0x2f2   :  { %511 = vrot.lane.b32.xlu1 %v1969_v28, %s1983_s19 }
 0x2f3   :  { %509 = vrot.lane.b32.xlu0 %v1971_v29, %s1983_s19 }
 0x2f6   :  { %519 = vrot.lane.b32.xlu1 %v1428_v30, %s1984_s13 }
 0x2f7   :  { %517 = vrot.lane.b32.xlu0 %v1427_v31, %s1984_s13 }
 0x35c   :  { %v490_v21 = vpop.permute.xlu1 %489 }
 0x35d   :  { %v488_v22 = vpop.permute.xlu0 %487  ;;  %v524_v30 = vsel %vm120_vm0, %v2089_v26, %v490_v21 }
 0x35e   :  { %v523_v31 = vsel %vm120_vm0, %v2091_v27, %v488_v22  ;;  %v526_v34 = vsel %vm218_vm2, %v524_v30, %v498_v19  ;;  %vm1160_vm0 = vcmask 1044480  }
 0x35f   :  { %v525_v36 = vsel %vm218_vm2, %v523_v31, %v496_v20 }
 0x360   :  { %v506_v28 = vpop.permute.xlu1 %505 }
 0x361   :  { %v504_v29 = vpop.permute.xlu0 %503  ;;  %v529_v35 = vsel %vm527_vm3, %v526_v34, %v506_v28 }
 0x362   :  { %v528_v37 = vsel %vm527_vm3, %v525_v36, %v504_v29 }
 0x364   :  { %v512_v32 = vpop.permute.xlu1 %511 }
 0x365   :  { %v510_v33 = vpop.permute.xlu0 %509  ;;  %v532_v38 = vsel %vm530_vm4, %v529_v35, %v512_v32 }
 0x366   :  { %v531_v26 = vsel %vm530_vm4, %v528_v37, %v510_v33 }
 0x368   :  { %v520_v39 = vpop.permute.xlu1 %519 }
 0x369   :  { %v535_v40 = vsel %vm533_vm5, %v532_v38, %v520_v39  ;;  %v518_v27 = vpop.permute.xlu0 %517 }
 0x36a   :  { %v540_v41 = vrot.slane %v535_v40, 1  ;;  %v550_v42 = vrot.slane %v535_v40, 2  ;;  %v534_v43 = vsel %vm533_vm5, %v531_v26, %v518_v27 }
 0x36b   :  { %v539_v44 = vrot.slane %v534_v43, 1  ;;  %v549_v45 = vrot.slane %v534_v43, 2 }
 0x36d   :  { %v551_v46 = vsel %vm548_vm6, %v549_v45, %v550_v42  ;;  %v541_v47 = vsel %vm538_vm7, %v539_v44, %v540_v41 }
 0x36e   :  { %552 = vrot.lane.b32.xlu1 %v551_v46, %s1983_s19  ;;  %542 = vrot.lane.b32.xlu0 %v541_v47, %s1985_s12 }
 0x372   :  { %554 = vrot.lane.b32.xlu1 %v550_v42, %s1983_s19  ;;  %544 = vrot.lane.b32.xlu0 %v540_v41, %s1985_s12 }
 0x3e0   :  { %v553_v48 = vpop.permute.xlu1 %552  ;;  %v543_v49 = vpop.permute.xlu0 %542 }
 0x3e1   :  { %v559_v50 = vsel %vm558_vm8, %v534_v43, %v543_v49  ;;  %1632 = vmatprep.mubr.msk.f32.mxu1 %vm218_vm2, %v553_v48  ;;  %v561_v51 = vsel %vm530_vm4, %v543_v49, %v553_v48 }
 0x3e2   :  { %635 = vmatprep.mubr.f32.mxu0 %v561_v51 }
 0x3e3   :  { %636 = vmatmul.mubr.f32.vlgmr.msra.gmra.mrb[4].mxu0 %v559_v50 }
 0x3e4   :  { %v555_v52 = vpop.permute.xlu1 %554  ;;  %v545_v53 = vpop.permute.xlu0 %544  ;;  %1874 = vmatpush3.bf16.msra.mxu0 %v1873_v5 }
 0x3e5   :  { %1633 = vmatmul.mubr.msk.f32.vlgmr.msra.gmra.mrb[8].mxu1 %vm218_vm2, %v555_v52  ;;  %v562_v54 = vsel %vm530_vm4, %v545_v53, %v555_v52  ;;  %v560_v55 = vsel %vm558_vm8, %v535_v40, %v545_v53  ;;  %1875 = vmatprep.subr.bf16.mxu0 %v1986_v59  ;;  %vm1386_vm2 = vcmask 26624  }
 0x3e6   :  { %640 = vmatprep.mubr.f32.mxu0 %v562_v54  ;;  %1852 = vmatpush3.bf16.msra.mxu1 %v2241_v58 }
 0x3e7   :  { %641 = vmatmul.mubr.f32.gmra.mrb[6].mxu0 %v560_v55  ;;  %1853 = vmatprep.subr.bf16.mxu1 %v1986_v59  ;;  %v2325_v55 = vld [vmem:[%s2532_s2 + $0x300] sm:$0x1] }
 0x3e8   :  { %1659 = vmatprep.mubr.msk.f32.mxu1 %vm1987_vm9, %v1988_v10  ;;  %1693 = vmatprep.mubr.msk.f32.mxu0 %vm1987_vm9, %v1988_v10 }
 0x3e9   :  { %1877 = vmatpush3.bf16.msra.mxu0 %v1876_v8 }
 0x3ea   :  { %1855 = vmatpush3.bf16.msra.mxu1 %v2253_v62  ;;  %1878 = vmatprep.subr.bf16.mxu0 %v1986_v59 }
 0x3eb   :  { %1856 = vmatprep.subr.bf16.mxu1 %v1986_v59 }
 0x3ee   :  { %1858 = vmatpush3.bf16.msra.mxu1 %v2263_v1 }
 0x3ef   :  { %1859 = vmatprep.subr.bf16.mxu1 %v1986_v59 }
 0x3f2   :  { %1861 = vmatpush3.bf16.msra.mxu1 %v2273_v4 }
 0x3f3   :  { %1862 = vmatprep.subr.bf16.mxu1 %v1986_v59 }
 0x3f6   :  { %1864 = vmatpush3.bf16.msra.mxu1 %v2283_v7 }
 0x3f7   :  { %1865 = vmatprep.subr.bf16.mxu1 %v1986_v59 }
 0x3fa   :  { %1867 = vmatpush3.bf16.msra.mxu1 %v2296_v11 }
 0x3fb   :  { %1868 = vmatprep.subr.bf16.mxu1 %v1986_v59 }
 0x4b6   :  { %v1500_v12 = vpop.f32.mrb[4].mxu0 }
 0x4b7   :  { %v1501_v13 = vpop.f32.mrb[5].mxu0 }
 0x4b8   :  { %v1502_v15 = vadd.f32 %v1501_v13, %v1500_v12  ;;  %v1634_v16 = vpop.f32.mrb[8].mxu1  ;;  %v59_v12 = vld [vmem:[%s2532_s2 + $0x168] sm:$0xff] }
 0x4b9   :  { %v712_v17 = vpop.f32.mrb[9].mxu1  ;;  %v1879_v13 = vpack.c.bf16 %v59_v12, %v58_v9 }
 0x4ba   :  { %v638_v18 = vadd.f32 %v1502_v15, %v1429_v14  ;;  %v1503_v19 = vpop.f32.mrb[6].mxu0  ;;  %v61_v15 = vld [vmem:[%s2532_s2 + $0x178] sm:$0xff] }
 0x4bb   :  { %v1504_v20 = vpop.f32.mrb[7].mxu0  ;;  %1880 = vmatpush3.bf16.msra.mxu0 %v1879_v13 }
 0x4bc   :  { %v2304_v21 = vadd.f32 %v712_v17, %v638_v18  ;;  %v1505_v22 = vadd.f32 %v1504_v20, %v1503_v19  ;;  %1881 = vmatprep.subr.bf16.mxu0 %v1986_v59  ;;  %v62_v17 = vld [vmem:[%s2532_s2 + $0x180] sm:$0xff]  ;;  %v63_v18 = vld [vmem:[%s2532_s2 + $0x188] sm:$0xff]  ;;  %v64_v20 = vld [vmem:[%s2532_s2 + $0x190] sm:$0xff] }
 0x4bd   :  { %v1885_v19 = vpack.c.bf16 %v63_v18, %v62_v17 }
 0x4be   :  { %v643_v23 = vadd.f32 %v1505_v22, %v1429_v14  ;;  %v731_v24 = vmul.f32 %v2304_v21, %v2304_v21  ;;  %v721_v28 = vsel %vm558_vm8, %v2304_v21, 0.0  ;;  %v60_v14 = vld [vmem:[%s2532_s2 + $0x170] sm:$0xff]  ;;  %v65_v22 = vld [vmem:[%s2532_s2 + $0x198] sm:$0xff] }
 0x4c0   :  { %v2308_v25 = vadd.f32 %v1634_v16, %v643_v23  ;;  %v733_v32 = vsel %vm558_vm8, %v731_v24, 0.0  ;;  %v1882_v16 = vpack.c.bf16 %v61_v15, %v60_v14  ;;  %v1888_v23 = vpack.c.bf16 %v65_v22, %v64_v20 }
 0x4c1   :  { %v842_v24 = vlaneseq }
 0x4c2   :  { %v723_v29 = vsel %vm722_vm10, %v2308_v25, 0.0  ;;  %v732_v30 = vmul.f32 %v2308_v25, %v2308_v25  ;;  %1883 = vmatpush3.bf16.msra.mxu0 %v1882_v16 }
 0x4c3   :  { %v724_v31 = vadd.f32 %v723_v29, %v721_v28  ;;  %1884 = vmatprep.subr.bf16.mxu0 %v1986_v59  ;;  %v843_v28 = vshrl.u32 %v842_v24, 7 }
 0x4c4   :  { %v734_v33 = vsel %vm722_vm10, %v732_v30, 0.0 }
 0x4c5   :  { %v725_v34 = vrot.slane %v724_v31, 4  ;;  %v735_v35 = vadd.f32 %v734_v33, %v733_v32  ;;  %v2378_v29 = vsub.s32 0, %v843_v28 }
 0x4c6   :  { %1886 = vmatpush3.bf16.msra.mxu0 %v1885_v19 }
 0x4c7   :  { %v726_v36 = vadd.f32 %v725_v34, %v724_v31  ;;  %v736_v37 = vrot.slane %v735_v35, 4  ;;  %1887 = vmatprep.subr.bf16.mxu0 %v1986_v59 }
 0x4c9   :  { %v727_v38 = vrot.slane %v726_v36, 2  ;;  %v737_v39 = vadd.f32 %v736_v37, %v735_v35 }
 0x4ca   :  { %1889 = vmatpush3.bf16.msra.mxu0 %v1888_v23 }
 0x4cb   :  { %v728_v26 = vadd.f32 %v727_v38, %v726_v36  ;;  %v738_v40 = vrot.slane %v737_v39, 2  ;;  %1723 = vmatprep.subr.mxu0 %v1988_v10 }
 0x4cd   :  { %v729_v27 = vrot.slane %v728_v26, 1  ;;  %v739_v41 = vadd.f32 %v738_v40, %v737_v39 }
 0x4cf   :  { %v740_v42 = vrot.slane %v739_v41, 1  ;;  %v730_v43 = vadd.f32 %v729_v27, %v728_v26 }
 0x4d1   :  { %v741_v44 = vadd.f32 %v740_v42, %v739_v41 }
 0x4d3   :  { %v743_v45 = vsel %vm742_vm11, %v730_v43, %v741_v44 }
 0x4d4   :  { %1660 = vmatmul.mubr.msk.f32.vlgmr.msra.gmra.mrb[10].mxu1 %vm558_vm8, %v743_v45 }
 0x4d5   :  { %1666 = vmatprep.mubr.msk.f32.mxu1 %vm1987_vm9, %v1988_v10 }
 0x5a7   :  { %v813_v46 = vpop.f32.mrb[10].mxu1 }
 0x5a8   :  { %v817_v47 = vmul.f32 0.035714287, %v813_v46  ;;  %v1661_v48 = vpop.f32.mrb[11].mxu1 }
 0x5aa   :  { %v818_v49 = vmul.f32 %v817_v47, %v817_v47 }
 0x5ac   :  { %v820_v50 = vrot.slane %v818_v49, 7  ;;  %v106_v49 = vld [vmem:[%s2532_s2 + $0x2e0] sm:$0x3f] }
 0x5ae   :  { %v822_v51 = vsub.f32 %v817_v47, %v820_v50 }
 0x5b0   :  { %v823_v52 = vmax.f32 %v822_v51, 0.0 }
 0x5b2   :  { %v824_v53 = vadd.f32 1e-05, %v823_v52 }
 0x5b4   :  { %1972 = vrsqrt.f32 %v824_v53 }
 0x5be   :  { %v1973_v54 = vpop.eup %1972 }
 0x5bf   :  { %v827_v56 = vrot.slane %v1973_v54, 1 }
 0x5c1   :  { %v829_v57 = vmul.f32 %v827_v56, %v2325_v55 }
 0x5c3   :  { %833 = vrot.lane.b32.xlu0 %v829_v57, %s1982_s16  ;;  %v830_v61 = vmul.f32 %v829_v57, %v817_v47 }
 0x5c5   :  { %v831_v63 = vsub.f32 %v2331_v60, %v830_v61 }
 0x5c7   :  { %838 = vrot.lane.b32.xlu1 %v831_v63, %s1982_s16 }
 0x635   :  { %v834_v30 = vpop.permute.xlu0 %833 }
 0x636   :  { %v836_v31 = vsel %vm527_vm3, %v829_v57, %v834_v30  ;;  %v78_v30 = vld [vmem:[%s2532_s2 + $0x200] sm:$0xff] }
 0x637   :  { %v845_v32 = vrot.slane %v836_v31, %v2378_v29  ;;  %v79_v31 = vld [vmem:[%s2532_s2 + $0x208] sm:$0xff] }
 0x639   :  { %v839_v33 = vpop.permute.xlu1 %838  ;;  %v846_v35 = vmul.f32 %v845_v32, %v2304_v21  ;;  %v847_v36 = vmul.f32 %v845_v32, %v2308_v25  ;;  %v1927_v32 = vpack.c.bf16 %v79_v31, %v78_v30 }
 0x63a   :  { %v841_v34 = vsel %vm527_vm3, %v831_v63, %v839_v33 }
 0x63b   :  { %v851_v37 = vrot.slane %v841_v34, %v2378_v29  ;;  %v82_v34 = vld [vmem:[%s2532_s2 + $0x220] sm:$0xff] }
 0x63d   :  { %v852_v38 = vadd.f32 %v851_v37, %v846_v35  ;;  %v853_v39 = vadd.f32 %v851_v37, %v847_v36  ;;  %v83_v35 = vld [vmem:[%s2532_s2 + $0x228] sm:$0xff]  ;;  %v84_v37 = vld [vmem:[%s2532_s2 + $0x230] sm:$0xff] }
 0x63e   :  { %v1933_v36 = vpack.c.bf16 %v83_v35, %v82_v34 }
 0x63f   :  { %v854_v26 = vmax.f32 %v852_v38, 0.0  ;;  %v855_v40 = vmax.f32 %v853_v39, 0.0  ;;  %v85_v38 = vld [vmem:[%s2532_s2 + $0x238] sm:$0xff] }
 0x640   :  { %v1936_v39 = vpack.c.bf16 %v85_v38, %v84_v37 }
 0x641   :  { %v858_v27 = vrot.slane %v854_v26, 1  ;;  %v859_v41 = vrot.slane %v855_v40, 1  ;;  %v865_v42 = vrot.slane %v854_v26, 2  ;;  %v866_v43 = vrot.slane %v855_v40, 2 }
 0x643   :  { %v860_v44 = vsel %vm538_vm7, %v858_v27, %v859_v41  ;;  %v864_v45 = vmax.f32 %v855_v40, %v859_v41  ;;  %v867_v47 = vsel %vm548_vm6, %v865_v42, %v866_v43  ;;  %v87_v40 = vld [vmem:[%s2532_s2 + $0x248] sm:$0xff]  ;;  %v88_v41 = vld [vmem:[%s2532_s2 + $0x250] sm:$0xff]  ;;  %v89_v42 = vld [vmem:[%s2532_s2 + $0x258] sm:$0xff] }
 0x644   :  { %v863_v46 = vmax.f32 %v854_v26, %v860_v44  ;;  %v86_v26 = vld [vmem:[%s2532_s2 + $0x240] sm:$0xff] }
 0x645   :  { %v871_v21 = vmax.f32 %v864_v45, %v866_v43  ;;  %v1939_v27 = vpack.c.bf16 %v87_v40, %v86_v26  ;;  %v1942_v43 = vpack.c.bf16 %v89_v42, %v88_v41 }
 0x646   :  { %v870_v48 = vmax.f32 %v863_v46, %v867_v47 }
 0x648   :  { %v1869_v25 = vpack.c.bf16 %v871_v21, %v870_v48 }
 0x64a   :  { %1871 = vmatpush3.bf16.msk.msra.mxu1 %vm1870_vm14, %v1869_v25 }
 0x64b   :  { %1890 = vmatprep.subr.bf16.mxu1 %v1986_v59 }
 0x64d   :  { %1667 = vmatmul.mubr.msk.f32.vlgmr.msra.gmra.mrb[12].mxu1 %vm872_vm15, %v106_v49 }
 0x64e   :  { %1892 = vmatpush3.bf16.msra.mxu1 %v2241_v58  ;;  %1720 = vmatprep.mubr.msk.f32.mxu1 %vm1987_vm9, %v1988_v10 }
 0x64f   :  { %1893 = vmatprep.subr.bf16.mxu1 %v1986_v59 }
 0x652   :  { %1895 = vmatpush3.bf16.msra.mxu1 %v2253_v62 }
 0x653   :  { %1896 = vmatprep.subr.bf16.mxu1 %v1986_v59 }
 0x656   :  { %1898 = vmatpush3.bf16.msra.mxu1 %v2263_v1  ;;  %v1435_v1 = vld [vmem:[%s2532_s2 + $0x310] ss:$0 sm:$0xff] }
 0x657   :  { %1899 = vmatprep.subr.bf16.mxu1 %v1986_v59 }
 0x65a   :  { %1901 = vmatpush3.bf16.msra.mxu1 %v2273_v4 }
 0x65b   :  { %1902 = vmatprep.subr.bf16.mxu1 %v1986_v59 }
 0x65e   :  { %1904 = vmatpush3.bf16.msra.mxu1 %v2283_v7 }
 0x65f   :  { %1905 = vmatprep.subr.bf16.mxu1 %v1986_v59 }
 0x662   :  { %1907 = vmatpush3.bf16.msra.mxu1 %v2296_v11 }
 0x663   :  { %1926 = vmatprep.subr.bf16.mxu1 %v1986_v59 }
 0x720   :  { %v946_v58 = vpop.f32.mrb[12].mxu1 }
 0x721   :  { %v1668_v62 = vpop.f32.mrb[13].mxu1  ;;  %1694 = vmatmul.mubr.msk.f32.vlgmr.msra.gmra.mrb[8].mxu0 %vm558_vm8, %v946_v58 }
 0x722   :  { %1725 = vmatprep.mubr.msk.f32.mxu0 %vm1987_vm9, %v1988_v10  ;;  %v66_v62 = vld [vmem:[%s2532_s2 + $0x1a0] sm:$0xff] }
 0x7f4   :  { %v1023_v4 = vpop.f32.mrb[8].mxu0 }
 0x7f5   :  { %v2412_v50 = vadd.f32 %v1435_v1, %v1023_v4  ;;  %v1695_v7 = vpop.f32.mrb[9].mxu0  ;;  %v67_v1 = vld [vmem:[%s2532_s2 + $0x1a8] sm:$0xff] }
 0x7f7   :  { %v1027_v11 = vsel %vm722_vm10, %v2412_v50, 0.0  ;;  %v1034_v51 = vmul.f32 %v2412_v50, %v2412_v50 }
 0x7f8   :  { %v1028_v52 = vrot.slane %v1027_v11, 4 }
 0x7f9   :  { %v1035_v53 = vsel %vm722_vm10, %v1034_v51, 0.0  ;;  %v69_v51 = vld [vmem:[%s2532_s2 + $0x1b8] sm:$0xff] }
 0x7fa   :  { %v1029_v54 = vadd.f32 %v1028_v52, %v1027_v11  ;;  %v1036_v56 = vrot.slane %v1035_v53, 4  ;;  %v107_v11 = vld [vmem:[%s2532_s2 + $0x2e8] sm:$0x7] }
 0x7fc   :  { %v1030_v57 = vrot.slane %v1029_v54, 2  ;;  %v1037_v61 = vadd.f32 %v1036_v56, %v1035_v53  ;;  %v70_v53 = vld [vmem:[%s2532_s2 + $0x1c0] sm:$0xff] }
 0x7fe   :  { %v1031_v63 = vadd.f32 %v1030_v57, %v1029_v54  ;;  %v1038_v0 = vrot.slane %v1037_v61, 2  ;;  %v71_v54 = vld [vmem:[%s2532_s2 + $0x1c8] sm:$0xff]  ;;  %v72_v57 = vld [vmem:[%s2532_s2 + $0x1d0] sm:$0xff] }
 0x7ff   :  { %v1915_v56 = vpack.c.bf16 %v71_v54, %v70_v53 }
 0x800   :  { %v1032_v2 = vrot.slane %v1031_v63, 1  ;;  %v1039_v3 = vadd.f32 %v1038_v0, %v1037_v61  ;;  %v75_v0 = vld [vmem:[%s2532_s2 + $0x1e8] sm:$0xff] }
 0x802   :  { %v1040_v5 = vrot.slane %v1039_v3, 1  ;;  %v1033_v6 = vadd.f32 %v1032_v2, %v1031_v63  ;;  %v74_v63 = vld [vmem:[%s2532_s2 + $0x1e0] sm:$0xff] }
 0x803   :  { %v1921_v2 = vpack.c.bf16 %v75_v0, %v74_v63 }
 0x804   :  { %v1041_v8 = vadd.f32 %v1040_v5, %v1039_v3  ;;  %v76_v3 = vld [vmem:[%s2532_s2 + $0x1f0] sm:$0xff]  ;;  %v77_v5 = vld [vmem:[%s2532_s2 + $0x1f8] sm:$0xff] }
 0x806   :  { %v1042_v9 = vsel %vm742_vm11, %v1033_v6, %v1041_v8  ;;  %v1924_v6 = vpack.c.bf16 %v77_v5, %v76_v3 }
 0x807   :  { %1721 = vmatmul.mubr.msk.f32.vlgmr.msra.gmra.mrb[14].mxu1 %vm558_vm8, %v1042_v9 }
 0x808   :  { %1779 = vmatprep.mubr.msk.f32.mxu1 %vm1987_vm9, %v1988_v10  ;;  %1928 = vmatpush3.bf16.msra.mxu1 %v1927_v32 }
 0x809   :  { %1929 = vmatprep.subr.bf16.mxu1 %v1986_v59 }
 0x8da   :  { %v1112_v12 = vpop.f32.mrb[14].mxu1 }
 0x8db   :  { %v1116_v13 = vmul.f32 0.083333336, %v1112_v12  ;;  %v1722_v14 = vpop.f32.mrb[15].mxu1  ;;  %v1440_v12 = vld [vmem:[%s2532_s2 + $0x318] ss:$0 sm:$0xff] }
 0x8dd   :  { %v1117_v15 = vmul.f32 %v1116_v13, %v1116_v13 }
 0x8df   :  { %v1119_v16 = vrot.slane %v1117_v15, 7 }
 0x8e1   :  { %v1121_v17 = vsub.f32 %v1116_v13, %v1119_v16 }
 0x8e3   :  { %v1122_v18 = vmax.f32 %v1121_v17, 0.0 }
 0x8e5   :  { %v1123_v19 = vadd.f32 1e-05, %v1122_v18 }
 0x8e7   :  { %1974 = vrsqrt.f32 %v1123_v19 }
 0x8f1   :  { %v1975_v20 = vpop.eup %1974 }
 0x8f2   :  { %v1126_v22 = vrot.slane %v1975_v20, 1 }
 0x8f4   :  { %v1128_v23 = vmul.f32 %v1126_v22, %v2325_v55  ;;  %v80_v55 = vld [vmem:[%s2532_s2 + $0x210] sm:$0xff] }
 0x8f6   :  { %1132 = vrot.lane.b32.xlu0 %v1128_v23, %s1982_s16  ;;  %v1129_v24 = vmul.f32 %v1128_v23, %v1116_v13  ;;  %v1442_v13 = vld [vmem:[%s2532_s2 + $0x320] ss:$0 sm:$0xff] }
 0x8f8   :  { %v1130_v28 = vsub.f32 %v2331_v60, %v1129_v24  ;;  %v81_v60 = vld [vmem:[%s2532_s2 + $0x218] sm:$0xff] }
 0x8f9   :  { %v1930_v33 = vpack.c.bf16 %v81_v60, %v80_v55 }
 0x8fa   :  { %1137 = vrot.lane.b32.xlu1 %v1130_v28, %s1982_s16 }
 0x8fb   :  { %1931 = vmatpush3.bf16.msra.mxu1 %v1930_v33 }
 0x8fc   :  { %1932 = vmatprep.subr.bf16.mxu1 %v1986_v59 }
 0x8ff   :  { %1934 = vmatpush3.bf16.msra.mxu1 %v1933_v36 }
 0x900   :  { %1935 = vmatprep.subr.bf16.mxu1 %v1986_v59 }
 0x903   :  { %1937 = vmatpush3.bf16.msra.mxu1 %v1936_v39 }
 0x904   :  { %1938 = vmatprep.subr.bf16.mxu1 %v1986_v59 }
 0x907   :  { %1940 = vmatpush3.bf16.msra.mxu1 %v1939_v27 }
 0x908   :  { %1941 = vmatprep.subr.bf16.mxu1 %v1986_v59 }
 0x90b   :  { %1943 = vmatpush3.bf16.msra.mxu1 %v1942_v43 }
 0x968   :  { %v1133_v44 = vpop.permute.xlu0 %1132 }
 0x969   :  { %v1135_v45 = vsel %vm527_vm3, %v1128_v23, %v1133_v44 }
 0x96a   :  { %v1144_v46 = vrot.slane %v1135_v45, %v2378_v29 }
 0x96c   :  { %v1138_v47 = vpop.permute.xlu1 %1137  ;;  %v1145_v48 = vmul.f32 %v1144_v46, %v2412_v50  ;;  %v1909_v50 = vpack.c.bf16 %v67_v1, %v66_v62 }
 0x96d   :  { %v1140_v21 = vsel %vm527_vm3, %v1130_v28, %v1138_v47  ;;  %vm1402_vm3 = vcmask 24576  }
 0x96e   :  { %v1149_v25 = vrot.slane %v1140_v21, %v2378_v29  ;;  %v68_v29 = vld [vmem:[%s2532_s2 + $0x1b0] sm:$0xff] }
 0x96f   :  { %v1912_v52 = vpack.c.bf16 %v69_v51, %v68_v29 }
 0x970   :  { %v1150_v49 = vadd.f32 %v1149_v25, %v1145_v48 }
 0x972   :  { %v1151_v58 = vmax.f32 %v1150_v49, 0.0 }
 0x974   :  { %v1153_v4 = vrot.slane %v1151_v58, 1 }
 0x976   :  { %v1155_v7 = vmax.f32 %v1151_v58, %v1153_v4 }
 0x978   :  { %1724 = vmatpush3.msk.msra.mxu0 %vm1160_vm0, %v1155_v7 }
 0x979   :  { %1726 = vmatmul.mubr.msk.f32.vlgmr.msra.gmra.mrb[10].mxu0 %vm1156_vm1, %v107_v11  ;;  %1908 = vmatprep.subr.bf16.mxu0 %v1986_v59 }
 0x97a   :  { %1910 = vmatpush3.bf16.msra.mxu0 %v1909_v50  ;;  %1752 = vmatprep.mubr.msk.f32.mxu0 %vm1987_vm9, %v1988_v10  ;;  %v73_v10 = vld [vmem:[%s2532_s2 + $0x1d8] sm:$0xff] }
 0x97b   :  { %1911 = vmatprep.subr.bf16.mxu0 %v1986_v59  ;;  %v1918_v61 = vpack.c.bf16 %v73_v10, %v72_v57 }
 0x97e   :  { %1913 = vmatpush3.bf16.msra.mxu0 %v1912_v52 }
 0x97f   :  { %1914 = vmatprep.subr.bf16.mxu0 %v1986_v59 }
 0x982   :  { %1916 = vmatpush3.bf16.msra.mxu0 %v1915_v56 }
 0x983   :  { %1917 = vmatprep.subr.bf16.mxu0 %v1986_v59 }
 0x986   :  { %1919 = vmatpush3.bf16.msra.mxu0 %v1918_v61 }
 0x987   :  { %1920 = vmatprep.subr.bf16.mxu0 %v1986_v59 }
 0x98a   :  { %1922 = vmatpush3.bf16.msra.mxu0 %v1921_v2 }
 0x98b   :  { %1923 = vmatprep.subr.bf16.mxu0 %v1986_v59 }
 0x98e   :  { %1925 = vmatpush3.bf16.msra.mxu0 %v1924_v6 }
 0xa4c   :  { %v1230_v8 = vpop.f32.mrb[10].mxu0 }
 0xa4d   :  { %1753 = vmatmul.mubr.msk.f32.vlgmr.msra.gmra.mrb[12].mxu0 %vm558_vm8, %v1230_v8  ;;  %1780 = vmatmul.mubr.msk.f32.vlgmr.msra.gmra.mrb[16].mxu1 %vm558_vm8, %v1230_v8  ;;  %v1727_v9 = vpop.f32.mrb[11].mxu0 }
 0xb20   :  { %v1307_v14 = vpop.f32.mrb[12].mxu0  ;;  %v1381_v15 = vpop.f32.mrb[16].mxu1 }
 0xb21   :  { %v1308_v16 = vadd.f32 %v1440_v12, %v1307_v14  ;;  %v1382_v17 = vadd.f32 %v1442_v13, %v1381_v15  ;;  %v1754_v59 = vpop.f32.mrb[13].mxu0  ;;  %v1781_v18 = vpop.f32.mrb[17].mxu1 }
 0xb23   :  { %v1385_v19 = vmul.f32 %v1382_v17, %v1308_v16 }
 0xb25   :  { %v1387_v20 = vsel %vm1386_vm2, %v1385_v19, 0.0 }
 0xb26   :  { %v1388_v22 = vrot.slane %v1387_v20, 4 }
 0xb28   :  { %v1389_v23 = vadd.f32 %v1388_v22, %v1387_v20 }
 0xb2a   :  { %v1390_v24 = vrot.slane %v1389_v23, 2 }
 0xb2c   :  { %v1391_v28 = vadd.f32 %v1390_v24, %v1389_v23 }
 0xb2e   :  { %v1392_v30 = vrot.slane %v1391_v28, 1 }
 0xb30   :  { %v1393_v31 = vadd.f32 %v1392_v30, %v1391_v28 }
 0xb32   :  { %v1395_v32 = vmul.f32 0.33333334, %v1393_v31 }
 0xb34   :  { %v1396_v55 = vsub.f32 0.0, %v1395_v32 }
 0xb36   :  { %v1397_v60 = vmul.f32 1.442695, %v1396_v55 }
 0xb38   :  { %1976 = vpow2.f32 %v1397_v60 }
 0xb42   :  { %v1977_v33 = vpop.eup %1976 }
 0xb43   :  { %v1399_v34 = vadd.f32 1.0, %v1977_v33 }
 0xb45   :  { %1978 = vrcp.f32 %v1399_v34 }
 0xb4f   :  { %v1979_v35 = vpop.eup %1978 }
 0xb50   :  { %1403 = vst.msk [vmem:[%s2534_s3] sm:$0x1] %vm1402_vm3, %v1979_v35 }

</bundles_post_ra>
